<compile_context>
chip_gen: v7x
topology: tpu7x:2x2x1
jax: 0.10.0
libtpu: 0.0.40
codegen_flags: <defaults>
</compile_context>

<pallas_src>
import functools

import jax
import jax.numpy as jnp
from jax.experimental import pallas as pl
from jax.experimental.pallas import tpu as pltpu

# ---- config (mirrors config['n_layers'], config['hidden_dim'], and p) ------
P = 8                          # input feature dim p
DIM = 32                       # config['hidden_dim']
N_LAYERS = 4                   # config['n_layers']
HIDDEN_LAYERS = N_LAYERS - 2   # => 1 middle (dim+p -> dim) BayesianLinear

TILE_N = 1024                  # batch tile on the lane axis (multiple of 128)


def _sigmoid(z):
    # One EUP tanh per element instead of exp + Newton-iteration reciprocal.
    return 0.5 * jnp.tanh(0.5 * z) + 0.5


def _bayesian_net_kernel(n_middle, x_ref, *refs):
    """Fused forward on one batch tile, batch on the lane axis.

    x_ref : (P, TN)                 input tile, transposed (lane-dense batch)
    refs  : per-layer weights (all full VMEM-resident blocks) then out_ref:
            layer 0     : w0 (DIM, P), b0 (DIM, 1)
            middle i    : wh (DIM, DIM), wx (DIM, P), b (DIM, 1)
            last        : wh (DIM, 1),  wx (P, 1),   b (1, 1)
    out_ref : (1, TN)               lane-dense output tile
    """
    out_ref = refs[-1]
    wrefs = refs[:-1]

    xT = x_ref[...]                                           # (P, TN) f32

    # first layer: (DIM, P) @ (P, TN)
    w0 = wrefs[0][...]
    b0 = wrefs[1][...]
    h = _sigmoid(jnp.dot(w0, xT, preferred_element_type=jnp.float32) + b0)

    # middle layers: concat replaced by two dots into one f32 accumulator
    idx = 2
    for _ in range(n_middle):
        wh = wrefs[idx][...]                                  # (DIM, DIM)
        wx = wrefs[idx + 1][...]                              # (DIM, P)
        b = wrefs[idx + 2][...]                               # (DIM, 1)
        idx += 3
        z = (jnp.dot(wh, h, preferred_element_type=jnp.float32)
             + jnp.dot(wx, xT, preferred_element_type=jnp.float32)
             + b)
        h = _sigmoid(z)

    # last layer (out_features = 1): VPU multiply + sublane reduce, no MXU pass
    wh_l = wrefs[idx][...]                                    # (DIM, 1)
    wx_l = wrefs[idx + 1][...]                                # (P, 1)
    b_l = wrefs[idx + 2][...]                                 # (1, 1)
    z = (jnp.sum(h * wh_l, axis=0, keepdims=True)
         + jnp.sum(xT * wx_l, axis=0, keepdims=True)
         + b_l)                                               # (1, TN)
    out_ref[...] = _sigmoid(z).astype(out_ref.dtype)


def _const_spec(shape):
    """Full-array block that is identical for every grid step (stays resident)."""
    nd = len(shape)
    return pl.BlockSpec(shape, lambda i, _nd=nd: (0,) * _nd)


def bayesian_network_forward(x, params, *, tile_n=TILE_N):
    """x: (N, P) float32. params: list of (w_mu (out, in), b_mu (out,)) per layer."""
    x = jnp.asarray(x, jnp.float32)
    n, p = x.shape
    dim = params[0][0].shape[0]
    n_middle = len(params) - 2

    assert tile_n % 128 == 0
    n_pad = pl.cdiv(n, tile_n) * tile_n
    # Glue: pad the batch to a whole number of tiles and put it on the lane axis.
    x_pad = jnp.pad(x, ((0, n_pad - n), (0, 0)))
    xT = x_pad.T                                              # (P, n_pad)

    flat_inputs = [xT]
    in_specs = [pl.BlockSpec((p, tile_n), lambda i: (0, i))]

    # layer 0: PyTorch (out, in) layout is already what the transposed kernel wants
    w0, b0 = params[0]
    flat_inputs += [jnp.asarray(w0, jnp.float32),
                    jnp.asarray(b0, jnp.float32).reshape(dim, 1)]
    in_specs += [_const_spec((dim, p)), _const_spec((dim, 1))]

    # middle layers: split W into the h-part and the skip(x)-part
    for (w, b) in params[1:-1]:
        w = jnp.asarray(w, jnp.float32)                       # (dim, dim + p)
        flat_inputs += [w[:, :dim], w[:, dim:],
                        jnp.asarray(b, jnp.float32).reshape(dim, 1)]
        in_specs += [_const_spec((dim, dim)), _const_spec((dim, p)),
                     _const_spec((dim, 1))]

    # last layer: (1, dim + p) -> column vectors for the VPU reduce
    w_l, b_l = params[-1]
    w_l = jnp.asarray(w_l, jnp.float32)
    flat_inputs += [w_l[:, :dim].T, w_l[:, dim:].T,
                    jnp.asarray(b_l, jnp.float32).reshape(1, 1)]
    in_specs += [_const_spec((dim, 1)), _const_spec((p, 1)), _const_spec((1, 1))]

    out = pl.pallas_call(
        functools.partial(_bayesian_net_kernel, n_middle),
        out_shape=jax.ShapeDtypeStruct((1, n_pad), jnp.float32),
        grid=(n_pad // tile_n,),
        in_specs=in_specs,
        out_specs=pl.BlockSpec((1, tile_n), lambda i: (0, i)),
        compiler_params=pltpu.CompilerParams(
            # independent batch tiles -> sharded across both TCs on v7x
            dimension_semantics=("parallel",)),
    )(*flat_inputs)

    # Glue: drop padding, restore the module's (N, 1) output shape.
    return out[0, :n].reshape(n, 1)


def _init_params(key):
    """Deterministic init of the posterior-mean weights of each BayesianLinear."""
    sizes = [(P, DIM)]
    sizes += [(DIM + P, DIM) for _ in range(HIDDEN_LAYERS - 1)]
    sizes += [(DIM + P, 1)]
    params = []
    for (fan_in, fan_out) in sizes:
        key, kw, kb = jax.random.split(key, 3)
        bound = 1.0 / (fan_in ** 0.5)
        w = jax.random.uniform(kw, (fan_out, fan_in), jnp.float32, -bound, bound)
        b = jax.random.uniform(kb, (fan_out,), jnp.float32, -bound, bound)
        params.append((w, b))
    return params


def _reference_forward(x, params):
    """Pure-JAX reference mirroring the PyTorch forward (sample/ensemble=False)."""
    x_in = x
    h = jax.nn.sigmoid(x_in @ params[0][0].T + params[0][1])
    for (w, b) in params[1:-1]:
        h = jax.nn.sigmoid(jnp.concatenate([h, x_in], axis=1) @ w.T + b)
    w, b = params[-1]
    return jax.nn.sigmoid(jnp.concatenate([h, x_in], axis=1) @ w.T + b)


if __name__ == "__main__":
    key = jax.random.PRNGKey(0)
    k_x, k_p = jax.random.split(key)

    N = 16                                  # batch (already flattened to (-1, p))
    x = jax.random.normal(k_x, (N, P), jnp.float32)
    params = _init_params(k_p)

    out = bayesian_network_forward(x, params)
    out = jax.block_until_ready(out)

    ref = _reference_forward(x, params)
    assert out.shape == (N, 1)
    # tolerance covers possible bf16-rounded MXU passes on either side of the check
    assert jnp.allclose(out, ref, atol=2e-3, rtol=0.0), "mismatch vs reference"

    # TODO(synk): sample=True / ensemble=True paths (weight reparameterization
    # noise) and the kl() term are training-time machinery, not part of the
    # deterministic forward hot path, so they are not implemented in-kernel.
    print("KERNEL_OK")
</pallas_src>

<mosaic_0001>
module attributes {stable_mosaic.version = 11 : i64} {
  func.func @_bayesian_net_kernel(%arg0: i32, %arg1: memref<8x1024xf32, #tpu.memory_space<vmem>>, %arg2: memref<32x8xf32, #tpu.memory_space<vmem>>, %arg3: memref<32x1xf32, #tpu.memory_space<vmem>>, %arg4: memref<32x32xf32, #tpu.memory_space<vmem>>, %arg5: memref<32x8xf32, #tpu.memory_space<vmem>>, %arg6: memref<32x1xf32, #tpu.memory_space<vmem>>, %arg7: memref<32x1xf32, #tpu.memory_space<vmem>>, %arg8: memref<8x1xf32, #tpu.memory_space<vmem>>, %arg9: memref<1x1xf32, #tpu.memory_space<vmem>>, %arg10: memref<1x1024xf32, #tpu.memory_space<vmem>>) attributes {dimension_semantics = [#tpu.dimension_semantics<parallel>], iteration_bounds = array<i64: 1>, scalar_prefetch = 0 : i64, scratch_operands = 0 : i64, tpu.core_type = #tpu.core_type<tc>, window_params = [{transform_indices = @transform_0, window_bounds = array<i64: 8, 1024>}, {pipeline_mode = #tpu.pipeline_mode<synchronous>, transform_indices = @transform_1, window_bounds = array<i64: 32, 8>}, {pipeline_mode = #tpu.pipeline_mode<synchronous>, transform_indices = @transform_2, window_bounds = array<i64: 32, 1>}, {pipeline_mode = #tpu.pipeline_mode<synchronous>, transform_indices = @transform_3, window_bounds = array<i64: 32, 32>}, {pipeline_mode = #tpu.pipeline_mode<synchronous>, transform_indices = @transform_4, window_bounds = array<i64: 32, 8>}, {pipeline_mode = #tpu.pipeline_mode<synchronous>, transform_indices = @transform_5, window_bounds = array<i64: 32, 1>}, {pipeline_mode = #tpu.pipeline_mode<synchronous>, transform_indices = @transform_6, window_bounds = array<i64: 32, 1>}, {pipeline_mode = #tpu.pipeline_mode<synchronous>, transform_indices = @transform_7, window_bounds = array<i64: 8, 1>}, {pipeline_mode = #tpu.pipeline_mode<synchronous>, transform_indices = @transform_8, window_bounds = array<i64: 1, 1>}, {transform_indices = @transform_9, window_bounds = array<i64: 1, 1024>}]} {
    %c0 = arith.constant 0 : index
    %c0_0 = arith.constant 0 : index
    %0 = vector.load %arg1[%c0, %c0_0] : memref<8x1024xf32, #tpu.memory_space<vmem>>, vector<8x1024xf32>
    %c0_1 = arith.constant 0 : index
    %c0_2 = arith.constant 0 : index
    %1 = vector.load %arg2[%c0_1, %c0_2] : memref<32x8xf32, #tpu.memory_space<vmem>>, vector<32x8xf32>
    %c0_3 = arith.constant 0 : index
    %c0_4 = arith.constant 0 : index
    %2 = vector.load %arg3[%c0_3, %c0_4] : memref<32x1xf32, #tpu.memory_space<vmem>>, vector<32x1xf32>
    %cst = arith.constant dense<0.000000e+00> : vector<32x1024xf32>
    %3 = tpu.matmul %1, %0, %cst {dimension_numbers = #tpu.dot_dimension_numbers<[1], [0], [0], [1], [0, 0, 1, 1], [], []>} : vector<32x8xf32>, vector<8x1024xf32>, vector<32x1024xf32> -> vector<32x1024xf32>
    %4 = vector.broadcast %2 : vector<32x1xf32> to vector<32x1024xf32>
    %5 = arith.addf %3, %4 : vector<32x1024xf32>
    %cst_5 = arith.constant 5.000000e-01 : f32
    %6 = vector.broadcast %cst_5 : f32 to vector<32x1024xf32>
    %7 = arith.mulf %6, %5 : vector<32x1024xf32>
    %8 = math.tanh %7 : vector<32x1024xf32>
    %cst_6 = arith.constant 5.000000e-01 : f32
    %9 = vector.broadcast %cst_6 : f32 to vector<32x1024xf32>
    %10 = arith.mulf %9, %8 : vector<32x1024xf32>
    %cst_7 = arith.constant 5.000000e-01 : f32
    %11 = vector.broadcast %cst_7 : f32 to vector<32x1024xf32>
    %12 = arith.addf %10, %11 : vector<32x1024xf32>
    %c0_8 = arith.constant 0 : index
    %c0_9 = arith.constant 0 : index
    %13 = vector.load %arg4[%c0_8, %c0_9] : memref<32x32xf32, #tpu.memory_space<vmem>>, vector<32x32xf32>
    %c0_10 = arith.constant 0 : index
    %c0_11 = arith.constant 0 : index
    %14 = vector.load %arg5[%c0_10, %c0_11] : memref<32x8xf32, #tpu.memory_space<vmem>>, vector<32x8xf32>
    %c0_12 = arith.constant 0 : index
    %c0_13 = arith.constant 0 : index
    %15 = vector.load %arg6[%c0_12, %c0_13] : memref<32x1xf32, #tpu.memory_space<vmem>>, vector<32x1xf32>
    %cst_14 = arith.constant dense<0.000000e+00> : vector<32x1024xf32>
    %16 = tpu.matmul %13, %12, %cst_14 {dimension_numbers = #tpu.dot_dimension_numbers<[1], [0], [0], [1], [0, 0, 1, 1], [], []>} : vector<32x32xf32>, vector<32x1024xf32>, vector<32x1024xf32> -> vector<32x1024xf32>
    %cst_15 = arith.constant dense<0.000000e+00> : vector<32x1024xf32>
    %17 = tpu.matmul %14, %0, %cst_15 {dimension_numbers = #tpu.dot_dimension_numbers<[1], [0], [0], [1], [0, 0, 1, 1], [], []>} : vector<32x8xf32>, vector<8x1024xf32>, vector<32x1024xf32> -> vector<32x1024xf32>
    %18 = arith.addf %16, %17 : vector<32x1024xf32>
    %19 = vector.broadcast %15 : vector<32x1xf32> to vector<32x1024xf32>
    %20 = arith.addf %18, %19 : vector<32x1024xf32>
    %cst_16 = arith.constant 5.000000e-01 : f32
    %21 = vector.broadcast %cst_16 : f32 to vector<32x1024xf32>
    %22 = arith.mulf %21, %20 : vector<32x1024xf32>
    %23 = math.tanh %22 : vector<32x1024xf32>
    %cst_17 = arith.constant 5.000000e-01 : f32
    %24 = vector.broadcast %cst_17 : f32 to vector<32x1024xf32>
    %25 = arith.mulf %24, %23 : vector<32x1024xf32>
    %cst_18 = arith.constant 5.000000e-01 : f32
    %26 = vector.broadcast %cst_18 : f32 to vector<32x1024xf32>
    %27 = arith.addf %25, %26 : vector<32x1024xf32>
    %c0_19 = arith.constant 0 : index
    %c0_20 = arith.constant 0 : index
    %28 = vector.load %arg7[%c0_19, %c0_20] : memref<32x1xf32, #tpu.memory_space<vmem>>, vector<32x1xf32>
    %c0_21 = arith.constant 0 : index
    %c0_22 = arith.constant 0 : index
    %29 = vector.load %arg8[%c0_21, %c0_22] : memref<8x1xf32, #tpu.memory_space<vmem>>, vector<8x1xf32>
    %c0_23 = arith.constant 0 : index
    %c0_24 = arith.constant 0 : index
    %30 = vector.load %arg9[%c0_23, %c0_24] : memref<1x1xf32, #tpu.memory_space<vmem>>, vector<1x1xf32>
    %31 = vector.broadcast %28 : vector<32x1xf32> to vector<32x1024xf32>
    %32 = arith.mulf %27, %31 : vector<32x1024xf32>
    %cst_25 = arith.constant dense<0.000000e+00> : vector<1024xf32>
    %33 = vector.multi_reduction <add>, %32, %cst_25 [0] : vector<32x1024xf32> to vector<1024xf32>
    %34 = vector.shape_cast %33 : vector<1024xf32> to vector<1x1024xf32>
    %35 = vector.broadcast %29 : vector<8x1xf32> to vector<8x1024xf32>
    %36 = arith.mulf %0, %35 : vector<8x1024xf32>
    %cst_26 = arith.constant dense<0.000000e+00> : vector<1024xf32>
    %37 = vector.multi_reduction <add>, %36, %cst_26 [0] : vector<8x1024xf32> to vector<1024xf32>
    %38 = vector.shape_cast %37 : vector<1024xf32> to vector<1x1024xf32>
    %39 = arith.addf %34, %38 : vector<1x1024xf32>
    %40 = vector.broadcast %30 : vector<1x1xf32> to vector<1x1024xf32>
    %41 = arith.addf %39, %40 : vector<1x1024xf32>
    %cst_27 = arith.constant 5.000000e-01 : f32
    %42 = vector.broadcast %cst_27 : f32 to vector<1x1024xf32>
    %43 = arith.mulf %42, %41 : vector<1x1024xf32>
    %44 = math.tanh %43 : vector<1x1024xf32>
    %cst_28 = arith.constant 5.000000e-01 : f32
    %45 = vector.broadcast %cst_28 : f32 to vector<1x1024xf32>
    %46 = arith.mulf %45, %44 : vector<1x1024xf32>
    %cst_29 = arith.constant 5.000000e-01 : f32
    %47 = vector.broadcast %cst_29 : f32 to vector<1x1024xf32>
    %48 = arith.addf %46, %47 : vector<1x1024xf32>
    %c0_30 = arith.constant 0 : index
    %c0_31 = arith.constant 0 : index
    %49 = vector.load %arg10[%c0_30, %c0_31] : memref<1x1024xf32, #tpu.memory_space<vmem>>, vector<1x1024xf32>
    tpu.vector_store %arg10[%c0_30, %c0_31], %48 {strides = array<i32>} : memref<1x1024xf32, #tpu.memory_space<vmem>>, vector<1x1024xf32>,
    return
  }
  func.func @transform_0(%arg0: i32) -> (i32, i32) {
    %c0_i32 = arith.constant 0 : i32
    %c0_i32_0 = arith.constant 0 : i32
    return %c0_i32, %arg0 : i32, i32
  }
  func.func @transform_1(%arg0: i32) -> (i32, i32) {
    %c0_i32 = arith.constant 0 : i32
    %c0_i32_0 = arith.constant 0 : i32
    %c0_i32_1 = arith.constant 0 : i32
    return %c0_i32, %c0_i32_0 : i32, i32
  }
  func.func @transform_2(%arg0: i32) -> (i32, i32) {
    %c0_i32 = arith.constant 0 : i32
    %c0_i32_0 = arith.constant 0 : i32
    %c0_i32_1 = arith.constant 0 : i32
    return %c0_i32, %c0_i32_0 : i32, i32
  }
  func.func @transform_3(%arg0: i32) -> (i32, i32) {
    %c0_i32 = arith.constant 0 : i32
    %c0_i32_0 = arith.constant 0 : i32
    %c0_i32_1 = arith.constant 0 : i32
    return %c0_i32, %c0_i32_0 : i32, i32
  }
  func.func @transform_4(%arg0: i32) -> (i32, i32) {
    %c0_i32 = arith.constant 0 : i32
    %c0_i32_0 = arith.constant 0 : i32
    %c0_i32_1 = arith.constant 0 : i32
    return %c0_i32, %c0_i32_0 : i32, i32
  }
  func.func @transform_5(%arg0: i32) -> (i32, i32) {
    %c0_i32 = arith.constant 0 : i32
    %c0_i32_0 = arith.constant 0 : i32
    %c0_i32_1 = arith.constant 0 : i32
    return %c0_i32, %c0_i32_0 : i32, i32
  }
  func.func @transform_6(%arg0: i32) -> (i32, i32) {
    %c0_i32 = arith.constant 0 : i32
    %c0_i32_0 = arith.constant 0 : i32
    %c0_i32_1 = arith.constant 0 : i32
    return %c0_i32, %c0_i32_0 : i32, i32
  }
  func.func @transform_7(%arg0: i32) -> (i32, i32) {
    %c0_i32 = arith.constant 0 : i32
    %c0_i32_0 = arith.constant 0 : i32
    %c0_i32_1 = arith.constant 0 : i32
    return %c0_i32, %c0_i32_0 : i32, i32
  }
  func.func @transform_8(%arg0: i32) -> (i32, i32) {
    %c0_i32 = arith.constant 0 : i32
    %c0_i32_0 = arith.constant 0 : i32
    %c0_i32_1 = arith.constant 0 : i32
    return %c0_i32, %c0_i32_0 : i32, i32
  }
  func.func @transform_9(%arg0: i32) -> (i32, i32) {
    %c0_i32 = arith.constant 0 : i32
    %c0_i32_0 = arith.constant 0 : i32
    return %c0_i32, %arg0 : i32, i32
  }
}

</mosaic_0001>

<bundles_post_ra>
// kernel: tpu_custom_call.1
= control target key start
LH: loop header
LB: loop body
LE: loop exit
PB: predicated region body
PF: predicated region fallthrough
CT: control target
= control target key end

     0   :  { %s2664_s0 = inlined_call_operand.vmem [shape: f32[8,1024], index: 0, kind: input, shape index: {}]   ;;  %s2665_s1 = inlined_call_operand.vmem [shape: f32[32,8], index: 1, kind: input, shape index: {}]   ;;  %s2666_s2 = inlined_call_operand.vmem [shape: f32[32,1], index: 2, kind: input, shape index: {}]   ;;  %s2667_s3 = inlined_call_operand.vmem [shape: f32[32,32], index: 3, kind: input, shape index: {}]   ;;  %s2668_s4 = inlined_call_operand.vmem [shape: f32[32,8], index: 4, kind: input, shape index: {}]   ;;  %s2669_s5 = inlined_call_operand.vmem [shape: f32[32,1], index: 5, kind: input, shape index: {}]   ;;  %s2670_s6 = inlined_call_operand.vmem [shape: f32[32,1], index: 6, kind: input, shape index: {}]   ;;  %s2671_s7 = inlined_call_operand.vmem [shape: f32[8,1], index: 7, kind: input, shape index: {}]   ;;  %s2672_s8 = inlined_call_operand.<no memory space> [shape: f32[1,1], index: 8, kind: input, shape index: {}]   ;;  %s2673_s9 = inlined_call_operand.hbm [shape: f32[1,1024], index: 9, kind: output, shape index: {}]  }
   0x1   :  { %v14_v0 = vstv %s2672_s8 }
   0x2   :  { %15 = vst [vmem:[#allocation2] sm:$0x1] %v14_v0 }
   0x3   :  { %v2164_v1 = vld [vmem:[%s2664_s0 + $0x8] sm:$0xff]  ;;  %v2169_v2 = vld [vmem:[%s2664_s0 + $0x18] sm:$0xff]  ;;  %v2174_v3 = vld [vmem:[%s2664_s0] sm:$0xff]  ;;  %vm71_vm0 = vcmask 64512   ;;  %v2104_v6 = vmov 0.0  }
   0x4   :  { %84 = vmatprep.subr.mxu0 %v2164_v1  ;;  %173 = vmatprep.subr.mxu1 %v2169_v2  ;;  %v2181_v4 = vld [vmem:[%s2664_s0 + $0x10] sm:$0xff]  ;;  %v43_v5 = vld [vmem:[%s2665_s1] sm:$0xff]  ;;  %v2193_v7 = vld [vmem:[%s2664_s0 + $0x28] sm:$0xff] }
   0x5   :  { %85 = vmatpush1.msra.mxu0 %v2174_v3  ;;  %148 = vmatprep.mubr.f32.mxu0 %v2104_v6  ;;  %v2198_v8 = vld [vmem:[%s2664_s0 + $0x38] sm:$0xff]  ;;  %v2205_v9 = vld [vmem:[%s2664_s0 + $0x20] sm:$0xff]  ;;  %v2210_v10 = vld [vmem:[%s2664_s0 + $0x30] sm:$0xff] }
   0x6   :  { %174 = vmatpush1.msra.mxu1 %v2181_v4  ;;  %237 = vmatprep.mubr.f32.mxu1 %v2104_v6  ;;  %v44_v11 = vld [vmem:[%s2665_s1 + $0x8] sm:$0xff]  ;;  %v47_v12 = vld [vmem:[%s2666_s2] sm:$0xff]  ;;  %v49_v13 = vld [vmem:[%s2666_s2 + $0x10] sm:$0xff] }
   0x7   :  { %1818 = vmatmul.mubr.msk.f32.vlgmr.msra.gmra.mrb[0].mxu0 %vm71_vm0, %v43_v5  ;;  %1822 = vmatmul.mubr.msk.f32.vlgmr.msra.gmra.mrb[0].mxu1 %vm71_vm0, %v43_v5 }
   0x8   :  { %154 = vmatprep.mubr.f32.mxu0 %v2104_v6  ;;  %243 = vmatprep.mubr.f32.mxu1 %v2104_v6 }
   0x9   :  { %262 = vmatprep.subr.mxu0 %v2193_v7  ;;  %351 = vmatprep.subr.mxu1 %v2198_v8 }
   0xa   :  { %263 = vmatpush1.msra.mxu0 %v2205_v9  ;;  %352 = vmatpush1.msra.mxu1 %v2210_v10 }
   0xb   :  { %1819 = vmatmul.mubr.msk.f32.gmra.mrb[2].mxu0 %vm71_vm0, %v44_v11  ;;  %1823 = vmatmul.mubr.msk.f32.gmra.mrb[2].mxu1 %vm71_vm0, %v44_v11 }
   0xc   :  { %16 = vsyncpa [#allocation4], 0  ;;  %160 = vmatprep.mubr.f32.mxu0 %v2104_v6  ;;  %249 = vmatprep.mubr.f32.mxu1 %v2104_v6  ;;  %v45_v14 = vld [vmem:[%s2665_s1 + $0x10] sm:$0xff]  ;;  %v2105_v15 = vmov 0   ;;  %v48_v16 = vld [vmem:[%s2666_s2 + $0x8] sm:$0xff]  ;;  %vm948_vm1 = vcmask 261120  }
   0xd   :  { %1934 = vset.pattern.permute.xlu0 %v2105_v15  ;;  %1935 = vset.pattern.permute.xlu1 %v2105_v15  ;;  %v50_v17 = vld [vmem:[%s2666_s2 + $0x18] sm:$0xff]  ;;  %v576_v19 = vld [vmem:[%s2669_s5] sm:$0xff]  ;;  %v577_v20 = vld [vmem:[%s2669_s5 + $0x8] sm:$0xff] }
   0xe   :  { %53 = vperm.xlu0 %1934, %v47_v12   ;;  %63 = vperm.xlu1 %1935, %v49_v13   ;;  %v46_v18 = vld [vmem:[%s2665_s1 + $0x18] sm:$0xff]  ;;  %v578_v21 = vld [vmem:[%s2669_s5 + $0x10] sm:$0xff]  ;;  %v1497_v23 = vld [vmem:[%s2670_s6] sm:$0xff] }
   0xf   :  { %1820 = vmatmul.mubr.msk.f32.gmra.mrb[4].mxu0 %vm71_vm0, %v45_v14  ;;  %1824 = vmatmul.mubr.msk.f32.gmra.mrb[4].mxu1 %vm71_vm0, %v45_v14  ;;  %v579_v22 = vld [vmem:[%s2669_s5 + $0x18] sm:$0xff]  ;;  %v1498_v24 = vld [vmem:[%s2670_s6 + $0x8] sm:$0xff]  ;;  %v1499_v25 = vld [vmem:[%s2670_s6 + $0x10] sm:$0xff] }
  0x10   :  { %166 = vmatprep.mubr.f32.mxu0 %v2104_v6  ;;  %255 = vmatprep.mubr.f32.mxu1 %v2104_v6  ;;  %v1500_v26 = vld [vmem:[%s2670_s6 + $0x18] sm:$0xff]  ;;  %v1501_v27 = vld [vmem:[%s2671_s7] sm:$0xff]  ;;  %v573_v30 = vld [vmem:[%s2668_s4 + $0x8] sm:$0xff] }
  0x11   :  { %592 = vmatprep.subr.mxu0 %v2164_v1  ;;  %681 = vmatprep.subr.mxu1 %v2169_v2  ;;  %v1502_v28 = vld [vmem:[#allocation2] sm:$0x1]  ;;  %v574_v31 = vld [vmem:[%s2668_s4 + $0x10] sm:$0xff]  ;;  %v575_v32 = vld [vmem:[%s2668_s4 + $0x18] sm:$0xff] }
  0x12   :  { %58 = vperm.xlu0 %1934, %v48_v16   ;;  %68 = vperm.xlu1 %1935, %v50_v17   ;;  %v572_v29 = vld [vmem:[%s2668_s4] sm:$0xff] }
  0x13   :  { %1821 = vmatmul.mubr.msk.f32.gmra.mrb[6].mxu0 %vm71_vm0, %v46_v18  ;;  %1825 = vmatmul.mubr.msk.f32.gmra.mrb[6].mxu1 %vm71_vm0, %v46_v18 }
  0x14   :  { %326 = vmatprep.mubr.f32.mxu0 %v2104_v6  ;;  %415 = vmatprep.mubr.f32.mxu1 %v2104_v6 }
  0x16   :  { %1319 = vperm.xlu0 %1934, %v576_v19   ;;  %1324 = vperm.xlu1 %1935, %v577_v20  }
  0x17   :  { %1826 = vmatmul.mubr.msk.f32.vlgmr.msra.gmra.mrb[8].mxu0 %vm71_vm0, %v43_v5  ;;  %1830 = vmatmul.mubr.msk.f32.vlgmr.msra.gmra.mrb[8].mxu1 %vm71_vm0, %v43_v5 }
  0x18   :  { %332 = vmatprep.mubr.f32.mxu0 %v2104_v6  ;;  %421 = vmatprep.mubr.f32.mxu1 %v2104_v6 }
  0x19   :  { %593 = vmatpush1.msra.mxu0 %v2174_v3  ;;  %682 = vmatpush1.msra.mxu1 %v2181_v4 }
  0x1a   :  { %1329 = vperm.xlu0 %1934, %v578_v21   ;;  %1334 = vperm.xlu1 %1935, %v579_v22  }
  0x1b   :  { %1827 = vmatmul.mubr.msk.f32.gmra.mrb[10].mxu0 %vm71_vm0, %v44_v11  ;;  %1831 = vmatmul.mubr.msk.f32.gmra.mrb[10].mxu1 %vm71_vm0, %v44_v11 }
  0x1c   :  { %338 = vmatprep.mubr.f32.mxu0 %v2104_v6  ;;  %427 = vmatprep.mubr.f32.mxu1 %v2104_v6 }
  0x1d   :  { %770 = vmatprep.subr.mxu0 %v2193_v7  ;;  %859 = vmatprep.subr.mxu1 %v2198_v8 }
  0x1e   :  { %1505 = vperm.xlu0 %1934, %v1497_v23   ;;  %1510 = vperm.xlu1 %1935, %v1498_v24  }
  0x1f   :  { %1828 = vmatmul.mubr.msk.f32.gmra.mrb[12].mxu0 %vm71_vm0, %v45_v14  ;;  %1832 = vmatmul.mubr.msk.f32.gmra.mrb[12].mxu1 %vm71_vm0, %v45_v14 }
  0x20   :  { %344 = vmatprep.mubr.f32.mxu0 %v2104_v6  ;;  %433 = vmatprep.mubr.f32.mxu1 %v2104_v6 }
  0x22   :  { %1515 = vperm.xlu0 %1934, %v1499_v25   ;;  %1520 = vperm.xlu1 %1935, %v1500_v26  }
  0x23   :  { %1829 = vmatmul.mubr.msk.f32.gmra.mrb[14].mxu0 %vm71_vm0, %v46_v18  ;;  %1833 = vmatmul.mubr.msk.f32.gmra.mrb[14].mxu1 %vm71_vm0, %v46_v18 }
  0x24   :  { %656 = vmatprep.mubr.f32.mxu0 %v2104_v6  ;;  %745 = vmatprep.mubr.f32.mxu1 %v2104_v6 }
  0x26   :  { %1629 = vperm.xlu0 %1934, %v1501_v27   ;;  %1698 = vperm.xlu1 %1935, %v1502_v28  }
  0x27   :  { %1834 = vmatmul.mubr.msk.f32.vlgmr.msra.gmra.mrb[16].mxu0 %vm71_vm0, %v572_v29  ;;  %1838 = vmatmul.mubr.msk.f32.vlgmr.msra.gmra.mrb[16].mxu1 %vm71_vm0, %v572_v29 }
  0x28   :  { %662 = vmatprep.mubr.f32.mxu0 %v2104_v6  ;;  %751 = vmatprep.mubr.f32.mxu1 %v2104_v6 }
  0x29   :  { %771 = vmatpush1.msra.mxu0 %v2205_v9  ;;  %860 = vmatpush1.msra.mxu1 %v2210_v10 }
  0x2b   :  { %1835 = vmatmul.mubr.msk.f32.gmra.mrb[18].mxu0 %vm71_vm0, %v573_v30  ;;  %1839 = vmatmul.mubr.msk.f32.gmra.mrb[18].mxu1 %vm71_vm0, %v573_v30 }
  0x2c   :  { %668 = vmatprep.mubr.f32.mxu0 %v2104_v6  ;;  %757 = vmatprep.mubr.f32.mxu1 %v2104_v6 }
  0x2f   :  { %1836 = vmatmul.mubr.msk.f32.gmra.mrb[20].mxu0 %vm71_vm0, %v574_v31  ;;  %1840 = vmatmul.mubr.msk.f32.gmra.mrb[20].mxu1 %vm71_vm0, %v574_v31 }
  0x30   :  { %674 = vmatprep.mubr.f32.mxu0 %v2104_v6  ;;  %763 = vmatprep.mubr.f32.mxu1 %v2104_v6 }
  0x33   :  { %1837 = vmatmul.mubr.msk.f32.gmra.mrb[22].mxu0 %vm71_vm0, %v575_v32  ;;  %1841 = vmatmul.mubr.msk.f32.gmra.mrb[22].mxu1 %vm71_vm0, %v575_v32 }
  0x34   :  { %834 = vmatprep.mubr.f32.mxu0 %v2104_v6  ;;  %923 = vmatprep.mubr.f32.mxu1 %v2104_v6 }
  0x37   :  { %1842 = vmatmul.mubr.msk.f32.vlgmr.msra.gmra.mrb[24].mxu0 %vm71_vm0, %v572_v29  ;;  %1846 = vmatmul.mubr.msk.f32.vlgmr.msra.gmra.mrb[24].mxu1 %vm71_vm0, %v572_v29 }
  0x38   :  { %840 = vmatprep.mubr.f32.mxu0 %v2104_v6  ;;  %929 = vmatprep.mubr.f32.mxu1 %v2104_v6 }
  0x3b   :  { %1843 = vmatmul.mubr.msk.f32.gmra.mrb[26].mxu0 %vm71_vm0, %v573_v30  ;;  %1847 = vmatmul.mubr.msk.f32.gmra.mrb[26].mxu1 %vm71_vm0, %v573_v30 }
  0x3c   :  { %846 = vmatprep.mubr.f32.mxu0 %v2104_v6  ;;  %935 = vmatprep.mubr.f32.mxu1 %v2104_v6 }
  0x3f   :  { %1844 = vmatmul.mubr.msk.f32.gmra.mrb[28].mxu0 %vm71_vm0, %v574_v31  ;;  %1848 = vmatmul.mubr.msk.f32.gmra.mrb[28].mxu1 %vm71_vm0, %v574_v31 }
  0x40   :  { %852 = vmatprep.mubr.f32.mxu0 %v2104_v6  ;;  %941 = vmatprep.mubr.f32.mxu1 %v2104_v6 }
  0x43   :  { %1845 = vmatmul.mubr.msk.f32.gmra.mrb[30].mxu0 %vm71_vm0, %v575_v32  ;;  %1849 = vmatmul.mubr.msk.f32.gmra.mrb[30].mxu1 %vm71_vm0, %v575_v32 }
  0x44   :  { %1025 = vmatprep.mubr.f32.mxu0 %v2104_v6  ;;  %1114 = vmatprep.mubr.f32.mxu1 %v2104_v6 }
  0x8d   :  { %v2346_v33 = vpop.permute.xlu0 %53  ;;  %v2354_v43 = vpop.permute.xlu1 %63 }
  0x91   :  { %v2352_v42 = vpop.permute.xlu0 %58  ;;  %v2364_v13 = vpop.permute.xlu1 %68 }
  0xda   :  { %v150_v34 = vpop.f32.mrb[0].mxu0  ;;  %v239_v35 = vpop.f32.mrb[0].mxu1 }
  0xdb   :  { %v151_v36 = vadd.f32 %v150_v34, %v2346_v33  ;;  %v240_v37 = vadd.f32 %v239_v35, %v2346_v33  ;;  %v152_v38 = vpop.f32.mrb[1].mxu0  ;;  %v241_v39 = vpop.f32.mrb[1].mxu1 }
  0xdc   :  { %v153_v40 = vadd.f32 %v152_v38, %v2346_v33  ;;  %v242_v41 = vadd.f32 %v241_v39, %v2346_v33 }
  0xdd   :  { %v440_v44 = vmul.f32 0.5, %v151_v36  ;;  %v442_v45 = vmul.f32 0.5, %v240_v37 }
  0xde   :  { %v441_v46 = vmul.f32 0.5, %v153_v40  ;;  %v443_v47 = vmul.f32 0.5, %v242_v41  ;;  %v156_v48 = vpop.f32.mrb[2].mxu0  ;;  %v245_v49 = vpop.f32.mrb[2].mxu1 }
  0xdf   :  { %1936 = vtanh.f32 %v440_v44  ;;  %v157_v50 = vadd.f32 %v156_v48, %v2352_v42  ;;  %v246_v51 = vadd.f32 %v245_v49, %v2352_v42  ;;  %v158_v52 = vpop.f32.mrb[3].mxu0  ;;  %v247_v53 = vpop.f32.mrb[3].mxu1 }
  0xe0   :  { %1938 = vtanh.f32 %v442_v45  ;;  %v159_v54 = vadd.f32 %v158_v52, %v2352_v42  ;;  %v248_v55 = vadd.f32 %v247_v53, %v2352_v42 }
  0xe1   :  { %1940 = vtanh.f32 %v441_v46  ;;  %v448_v56 = vmul.f32 0.5, %v157_v50  ;;  %v450_v57 = vmul.f32 0.5, %v246_v51 }
  0xe2   :  { %1942 = vtanh.f32 %v443_v47  ;;  %v449_v58 = vmul.f32 0.5, %v159_v54  ;;  %v451_v59 = vmul.f32 0.5, %v248_v55  ;;  %v162_v60 = vpop.f32.mrb[4].mxu0  ;;  %v251_v61 = vpop.f32.mrb[4].mxu1 }
  0xe3   :  { %1944 = vtanh.f32 %v448_v56  ;;  %v163_v62 = vadd.f32 %v162_v60, %v2354_v43  ;;  %v252_v63 = vadd.f32 %v251_v61, %v2354_v43  ;;  %v164_v0 = vpop.f32.mrb[5].mxu0  ;;  %v253_v5 = vpop.f32.mrb[5].mxu1 }
  0xe4   :  { %1946 = vtanh.f32 %v450_v57  ;;  %v165_v11 = vadd.f32 %v164_v0, %v2354_v43  ;;  %v254_v12 = vadd.f32 %v253_v5, %v2354_v43 }
  0xe5   :  { %1948 = vtanh.f32 %v449_v58  ;;  %v456_v14 = vmul.f32 0.5, %v163_v62  ;;  %v458_v15 = vmul.f32 0.5, %v252_v63 }
  0xe6   :  { %1950 = vtanh.f32 %v451_v59  ;;  %v457_v16 = vmul.f32 0.5, %v165_v11  ;;  %v459_v17 = vmul.f32 0.5, %v254_v12  ;;  %v168_v18 = vpop.f32.mrb[6].mxu0  ;;  %v257_v19 = vpop.f32.mrb[6].mxu1 }
  0xe7   :  { %1952 = vtanh.f32 %v456_v14  ;;  %v169_v20 = vadd.f32 %v168_v18, %v2364_v13  ;;  %v258_v21 = vadd.f32 %v257_v19, %v2364_v13  ;;  %v170_v22 = vpop.f32.mrb[7].mxu0  ;;  %v259_v23 = vpop.f32.mrb[7].mxu1 }
  0xe8   :  { %1954 = vtanh.f32 %v458_v15  ;;  %v171_v24 = vadd.f32 %v170_v22, %v2364_v13  ;;  %v260_v25 = vadd.f32 %v259_v23, %v2364_v13 }
  0xe9   :  { %v1937_v26 = vpop.eup %1936  ;;  %1956 = vtanh.f32 %v457_v16  ;;  %v464_v27 = vmul.f32 0.5, %v169_v20  ;;  %v466_v28 = vmul.f32 0.5, %v258_v21 }
  0xea   :  { %v1939_v29 = vpop.eup %1938  ;;  %v504_v30 = vmul.f32 0.5, %v1937_v26  ;;  %1958 = vtanh.f32 %v459_v17  ;;  %v465_v31 = vmul.f32 0.5, %v171_v24  ;;  %v467_v32 = vmul.f32 0.5, %v260_v25  ;;  %v328_v34 = vpop.f32.mrb[8].mxu0 }
  0xeb   :  { %v417_v35 = vpop.f32.mrb[8].mxu1  ;;  %v1941_v36 = vpop.eup %1940  ;;  %1960 = vtanh.f32 %v464_v27  ;;  %v329_v37 = vadd.f32 %v328_v34, %v2346_v33  ;;  %v506_v46 = vmul.f32 0.5, %v1939_v29 }
  0xec   :  { %v418_v38 = vadd.f32 %v417_v35, %v2346_v33  ;;  %v330_v39 = vpop.f32.mrb[9].mxu0  ;;  %v419_v40 = vpop.f32.mrb[9].mxu1  ;;  %1962 = vtanh.f32 %v466_v28  ;;  %v2373_v49 = vadd.f32 0.5, %v504_v30  ;;  %v505_v55 = vmul.f32 0.5, %v1941_v36 }
  0xed   :  { %v1943_v41 = vpop.eup %1942  ;;  %v331_v44 = vadd.f32 %v330_v39, %v2346_v33  ;;  %1964 = vtanh.f32 %v465_v31  ;;  %v444_v47 = vmul.f32 0.5, %v329_v37  ;;  %v420_v63 = vadd.f32 %v419_v40, %v2346_v33 }
  0xee   :  { %v1945_v45 = vpop.eup %1944  ;;  %1966 = vtanh.f32 %v467_v32  ;;  %v446_v51 = vmul.f32 0.5, %v418_v38  ;;  %v334_v52 = vpop.f32.mrb[10].mxu0  ;;  %v2378_v5 = vadd.f32 0.5, %v506_v46  ;;  %v507_v16 = vmul.f32 0.5, %v1943_v41 }
  0xef   :  { %v1947_v48 = vpop.eup %1946  ;;  %v512_v50 = vmul.f32 0.5, %v1945_v45  ;;  %v423_v53 = vpop.f32.mrb[10].mxu1  ;;  %1968 = vtanh.f32 %v444_v47  ;;  %v445_v57 = vmul.f32 0.5, %v331_v44  ;;  %v335_v14 = vadd.f32 %v334_v52, %v2352_v42 }
  0xf0   :  { %v1949_v54 = vpop.eup %1948  ;;  %v514_v56 = vmul.f32 0.5, %v1947_v48  ;;  %v336_v58 = vpop.f32.mrb[11].mxu0  ;;  %1970 = vtanh.f32 %v446_v51  ;;  %v447_v19 = vmul.f32 0.5, %v420_v63  ;;  %v2385_v23 = vadd.f32 0.5, %v505_v55 }
  0xf1   :  { %v425_v59 = vpop.f32.mrb[11].mxu1  ;;  %v1951_v60 = vpop.eup %1950  ;;  %v2375_v61 = vadd.f32 0.5, %v512_v50  ;;  %v513_v62 = vmul.f32 0.5, %v1949_v54  ;;  %1972 = vtanh.f32 %v445_v57  ;;  %v452_v24 = vmul.f32 0.5, %v335_v14 }
  0xf2   :  { %v1953_v0 = vpop.eup %1952  ;;  %v2380_v11 = vadd.f32 0.5, %v514_v56  ;;  %v515_v12 = vmul.f32 0.5, %v1951_v60  ;;  %v340_v20 = vpop.f32.mrb[12].mxu0  ;;  %v424_v31 = vadd.f32 %v423_v53, %v2352_v42  ;;  %v337_v36 = vadd.f32 %v336_v58, %v2352_v42 }
  0xf3   :  { %v1955_v15 = vpop.eup %1954  ;;  %v1868_v17 = vpack.c.bf16 %v2375_v61, %v2373_v49  ;;  %v520_v18 = vmul.f32 0.5, %v1953_v0  ;;  %v429_v21 = vpop.f32.mrb[12].mxu1  ;;  %v545_v28 = vadd.f32 0.5, %v513_v62  ;;  %1974 = vtanh.f32 %v452_v24 }
  0xf4   :  { %v1957_v22 = vpop.eup %1956  ;;  %v1876_v33 = vpack.c.bf16 %v2380_v11, %v2378_v5  ;;  %v342_v25 = vpop.f32.mrb[13].mxu0  ;;  %v547_v29 = vadd.f32 0.5, %v515_v12  ;;  %v522_v30 = vmul.f32 0.5, %v1955_v15  ;;  %1976 = vtanh.f32 %v447_v19 }
  0xf5   :  { %v431_v26 = vpop.f32.mrb[13].mxu1  ;;  %v1959_v27 = vpop.eup %1958  ;;  %v2390_v34 = vadd.f32 0.5, %v520_v18  ;;  %v521_v35 = vmul.f32 0.5, %v1957_v22  ;;  %v454_v39 = vmul.f32 0.5, %v424_v31  ;;  %v426_v40 = vadd.f32 %v425_v59, %v2352_v42 }
  0xf6   :  { %v1961_v32 = vpop.eup %1960  ;;  %v346_v41 = vpop.f32.mrb[14].mxu0  ;;  %v523_v46 = vmul.f32 0.5, %v1959_v27  ;;  %v453_v48 = vmul.f32 0.5, %v337_v36  ;;  %v341_v50 = vadd.f32 %v340_v20, %v2354_v43  ;;  %v2397_v58 = vadd.f32 0.5, %v522_v30 }
  0xf7   :  { %v1963_v37 = vpop.eup %1962  ;;  %v528_v38 = vmul.f32 0.5, %v1961_v32  ;;  %v435_v44 = vpop.f32.mrb[14].mxu1  ;;  %1978 = vtanh.f32 %v454_v39  ;;  %v455_v56 = vmul.f32 0.5, %v426_v40  ;;  %v539_v62 = vadd.f32 0.5, %v507_v16 }
  0xf8   :  { %v1965_v45 = vpop.eup %1964  ;;  %v530_v47 = vmul.f32 0.5, %v1963_v37  ;;  %v348_v51 = vpop.f32.mrb[15].mxu0  ;;  %1980 = vtanh.f32 %v453_v48  ;;  %v460_v0 = vmul.f32 0.5, %v341_v50  ;;  %v553_v12 = vadd.f32 0.5, %v521_v35 }
  0xf9   :  { %v437_v52 = vpop.f32.mrb[15].mxu1  ;;  %v1967_v53 = vpop.eup %1966  ;;  %v2395_v54 = vadd.f32 0.5, %v528_v38  ;;  %v529_v55 = vmul.f32 0.5, %v1965_v45  ;;  %1982 = vtanh.f32 %v455_v56  ;;  %v555_v14 = vadd.f32 0.5, %v523_v46 }
  0xfa   :  { %v1969_v57 = vpop.eup %1968  ;;  %v2399_v42 = vadd.f32 0.5, %v530_v47  ;;  %v531_v59 = vmul.f32 0.5, %v1967_v53  ;;  %v430_v22 = vadd.f32 %v429_v21, %v2354_v43  ;;  %v343_v24 = vadd.f32 %v342_v25, %v2354_v43 }
  0xfb   :  { %v1971_v60 = vpop.eup %1970  ;;  %v1872_v63 = vpack.c.bf16 %v2395_v54, %v2390_v34  ;;  %v508_v18 = vmul.f32 0.5, %v1969_v57  ;;  %v561_v19 = vadd.f32 0.5, %v529_v55  ;;  %v432_v16 = vadd.f32 %v431_v26, %v2354_v43 }
  0xfc   :  { %v1880_v15 = vpack.c.bf16 %v2399_v42, %v2397_v58  ;;  %v563_v20 = vadd.f32 0.5, %v531_v59  ;;  %v1973_v27 = vpop.eup %1972  ;;  %v510_v30 = vmul.f32 0.5, %v1971_v60  ;;  %v1866_v31 = vpack.c.bf16 %v545_v28, %v2385_v23  ;;  %v569_v59 = vld [vmem:[%s2667_s3 + $0x8] sm:$0xff] }
  0xfd   :  { %v1874_v32 = vpack.c.bf16 %v547_v29, %v539_v62  ;;  %1984 = vtanh.f32 %v460_v0  ;;  %v462_v34 = vmul.f32 0.5, %v430_v22  ;;  %v461_v35 = vmul.f32 0.5, %v343_v24  ;;  %v1975_v37 = vpop.eup %1974 }
  0xfe   :  { %v347_v36 = vadd.f32 %v346_v41, %v2364_v13  ;;  %v540_v38 = vadd.f32 0.5, %v508_v18  ;;  %v463_v39 = vmul.f32 0.5, %v432_v16  ;;  %1867 = vmatprep.subr.bf16.mxu0 %v1866_v31  ;;  %v436_v21 = vadd.f32 %v435_v44, %v2364_v13  ;;  %v1977_v40 = vpop.eup %1976  ;;  %v570_v18 = vld [vmem:[%s2667_s3 + $0x10] sm:$0xff] }
  0xff   :  { %1875 = vmatprep.subr.bf16.mxu1 %v1874_v32  ;;  %v349_v25 = vadd.f32 %v348_v51, %v2364_v13  ;;  %v516_v45 = vmul.f32 0.5, %v1975_v37  ;;  %1986 = vtanh.f32 %v462_v34  ;;  %1869 = vmatpush1.bf16.msra.mxu0 %v1868_v17  ;;  %v438_v23 = vadd.f32 %v437_v52, %v2364_v13  ;;  %v2422_v52 = vld [vmem:[%s2667_s3] sm:$0xff] }
 0x100   :  { %v468_v43 = vmul.f32 0.5, %v347_v36  ;;  %1877 = vmatpush1.bf16.msra.mxu1 %v1876_v33  ;;  %v509_v26 = vmul.f32 0.5, %v1973_v27  ;;  %1988 = vtanh.f32 %v461_v35  ;;  %v470_v28 = vmul.f32 0.5, %v436_v21 }
 0x101   :  { %v469_v29 = vmul.f32 0.5, %v349_v25  ;;  %v1979_v41 = vpop.eup %1978  ;;  %v548_v44 = vadd.f32 0.5, %v516_v45  ;;  %1990 = vtanh.f32 %v463_v39  ;;  %v471_v46 = vmul.f32 0.5, %v438_v23 }
 0x102   :  { %v1870_v47 = vpack.c.bf16 %v561_v19, %v553_v12  ;;  %v1981_v48 = vpop.eup %1980  ;;  %v511_v50 = vmul.f32 0.5, %v1977_v40  ;;  %v518_v51 = vmul.f32 0.5, %v1979_v41  ;;  %1992 = vtanh.f32 %v468_v43 }
 0x103   :  { %v1878_v49 = vpack.c.bf16 %v563_v20, %v555_v14  ;;  %v1983_v61 = vpop.eup %1982  ;;  %v1884_v17 = vpack.c.bf16 %v548_v44, %v540_v38  ;;  %v517_v5 = vmul.f32 0.5, %v1981_v48  ;;  %1994 = vtanh.f32 %v470_v28  ;;  %v571_v38 = vld [vmem:[%s2667_s3 + $0x18] sm:$0xff]  ;;  %v2467_v28 = vpop.permute.xlu0 %1319  ;;  %s2107_s3 = smov [#allocation3]  }
 0x104   :  { %1871 = vmatprep.subr.bf16.mxu0 %v1870_v47  ;;  %v542_v13 = vadd.f32 0.5, %v510_v30  ;;  %v550_v11 = vadd.f32 0.5, %v518_v51  ;;  %v519_v33 = vmul.f32 0.5, %v1983_v61  ;;  %1996 = vtanh.f32 %v469_v29  ;;  %s1810_s22 = sshll.u32 %s2107_s3, 4  ;;  %s1811_s22 = int_to_ptr.vmem [resolvable:$true] %s1810_s22 }
 0x105   :  { %1879 = vmatprep.subr.bf16.mxu1 %v1878_v49  ;;  %1873 = vmatpush1.bf16.msra.mxu0 %v1872_v63  ;;  %v541_v53 = vadd.f32 0.5, %v509_v26  ;;  %v549_v54 = vadd.f32 0.5, %v517_v5  ;;  %1998 = vtanh.f32 %v471_v46  ;;  %v543_v55 = vadd.f32 0.5, %v511_v50  ;;  %v2475_v46 = vpop.permute.xlu1 %1324  ;;  %s2080_s23 = scalar_lea.vmem %s1811_s22, 128  ;;  %p2085_p1 = scmp.lt.s32.totalorder %s1811_s22, %s1811_s22 }
 0x106   :  { %1881 = vmatpush1.bf16.msra.mxu1 %v1880_v15  ;;  %v1892_v56 = vpack.c.bf16 %v550_v11, %v542_v13  ;;  %v551_v57 = vadd.f32 0.5, %v519_v33  ;;  %v1701_v61 = vlaneseq  ;;  %p2081_p0 = scmp.ne.s32.totalorder %s1811_s22, %s2080_s23  ;;  %p2086_p2 = scmp.lt.s32.totalorder %s2080_s23, %s2080_s23 }
 0x107   :  { %v1985_v58 = vpop.eup %1984  ;;  %v1882_v42 = vpack.c.bf16 %v549_v54, %v541_v53  ;;  %v2469_v29 = vpop.permute.xlu0 %1329 }
 0x108   :  { %1850 = vmatmul.mubr.msk.f32.vlgmr.msra.gmra.mrb[16].mxu0 %vm948_vm1, %v2422_v52  ;;  %v1890_v60 = vpack.c.bf16 %v551_v57, %v543_v55  ;;  %v524_v12 = vmul.f32 0.5, %v1985_v58  ;;  %p2087_p3 = por %p2086_p2, %p2085_p1 }
 0x109   :  { %1854 = vmatmul.mubr.msk.f32.vlgmr.msra.gmra.mrb[16].mxu1 %vm948_vm1, %v2422_v52  ;;  %1031 = vmatprep.mubr.f32.mxu0 %v2104_v6  ;;  %v1987_v62 = vpop.eup %1986  ;;  %v2477_v48 = vpop.permute.xlu1 %1334 }
 0x10a   :  { %1120 = vmatprep.mubr.f32.mxu1 %v2104_v6  ;;  %1883 = vmatprep.subr.bf16.mxu0 %v1882_v42  ;;  %v1989_v63 = vpop.eup %1988  ;;  %v526_v15 = vmul.f32 0.5, %v1987_v62  ;;  %v556_v31 = vadd.f32 0.5, %v524_v12  ;;  %v2106_v42 = vmov 1966171168   ;;  %p2088_p4 = pnand %p2087_p3, %p2081_p0 }
 0x10b   :  { %1891 = vmatprep.subr.bf16.mxu1 %v1890_v60  ;;  %1885 = vmatpush1.bf16.msra.mxu0 %v1884_v17  ;;  %v1991_v0 = vpop.eup %1990  ;;  %v525_v20 = vmul.f32 0.5, %v1989_v63  ;;  %v2471_v41 = vpop.permute.xlu0 %1505 }
 0x10c   :  { %1851 = vmatmul.mubr.msk.f32.gmra.mrb[18].mxu0 %vm948_vm1, %v569_v59  ;;  %1893 = vmatpush1.bf16.msra.mxu1 %v1892_v56  ;;  %v1993_v14 = vpop.eup %1992  ;;  %v527_v27 = vmul.f32 0.5, %v1991_v0  ;;  %v558_v35 = vadd.f32 0.5, %v526_v15 }
 0x10d   :  { %1855 = vmatmul.mubr.msk.f32.gmra.mrb[18].mxu1 %vm948_vm1, %v569_v59  ;;  %1037 = vmatprep.mubr.f32.mxu0 %v2104_v6  ;;  %v1995_v19 = vpop.eup %1994  ;;  %v532_v22 = vmul.f32 0.5, %v1993_v14  ;;  %v557_v39 = vadd.f32 0.5, %v525_v20  ;;  %v2483_v13 = vpop.permute.xlu1 %1510 }
 0x10e   :  { %1126 = vmatprep.mubr.f32.mxu1 %v2104_v6  ;;  %v1997_v24 = vpop.eup %1996  ;;  %v534_v30 = vmul.f32 0.5, %v1995_v19  ;;  %v559_v40 = vadd.f32 0.5, %v527_v27 }
 0x10f   :  { %v1999_v16 = vpop.eup %1998  ;;  %v564_v32 = vadd.f32 0.5, %v532_v22  ;;  %v533_v34 = vmul.f32 0.5, %v1997_v24  ;;  %v2473_v44 = vpop.permute.xlu0 %1515 }
 0x110   :  { %1852 = vmatmul.mubr.msk.f32.gmra.mrb[20].mxu0 %vm948_vm1, %v570_v18  ;;  %v566_v36 = vadd.f32 0.5, %v534_v30  ;;  %v535_v37 = vmul.f32 0.5, %v1999_v16 }
 0x111   :  { %1856 = vmatmul.mubr.msk.f32.gmra.mrb[20].mxu1 %vm948_vm1, %v570_v18  ;;  %1043 = vmatprep.mubr.f32.mxu0 %v2104_v6  ;;  %v1888_v21 = vpack.c.bf16 %v564_v32, %v556_v31  ;;  %v565_v25 = vadd.f32 0.5, %v533_v34  ;;  %v2490_v56 = vpop.permute.xlu1 %1520 }
 0x112   :  { %1132 = vmatprep.mubr.f32.mxu1 %v2104_v6  ;;  %v1896_v45 = vpack.c.bf16 %v566_v36, %v558_v35  ;;  %v567_v43 = vadd.f32 0.5, %v535_v37 }
 0x113   :  { %v1886_v23 = vpack.c.bf16 %v565_v25, %v557_v39  ;;  %v1630_v47 = vpop.permute.xlu0 %1629 }
 0x114   :  { %1853 = vmatmul.mubr.msk.f32.gmra.mrb[22].mxu0 %vm948_vm1, %v571_v38  ;;  %v1894_v26 = vpack.c.bf16 %v567_v43, %v559_v40  ;;  %v1632_v50 = vmul.f32 %v1630_v47, %v2174_v3  ;;  %v1634_v51 = vmul.f32 %v1630_v47, %v2181_v4  ;;  %v1635_v49 = vmul.f32 %v1630_v47, %v2169_v2 }
 0x115   :  { %1857 = vmatmul.mubr.msk.f32.gmra.mrb[22].mxu1 %vm948_vm1, %v571_v38  ;;  %1203 = vmatprep.mubr.f32.mxu0 %v2104_v6  ;;  %v2488_v3 = vmul.f32 %v1630_v47, %v2205_v9  ;;  %v2494_v57 = vmul.f32 %v1630_v47, %v2193_v7  ;;  %v2500_v9 = vmul.f32 %v1630_v47, %v2210_v10 }
 0x116   :  { %1887 = vmatprep.subr.bf16.mxu0 %v1886_v23  ;;  %1292 = vmatprep.mubr.f32.mxu1 %v2104_v6  ;;  %v1640_v17 = vrot.slane %v1632_v50, 4  ;;  %v1652_v11 = vrot.slane %v1634_v51, 4  ;;  %v1658_v33 = vrot.slane %v1635_v49, 4  ;;  %v2505_v7 = vmul.f32 %v1630_v47, %v2198_v8  ;;  %v1699_v8 = vpop.permute.xlu1 %1698 }
 0x117   :  { %1895 = vmatprep.subr.bf16.mxu1 %v1894_v26  ;;  %1889 = vmatpush1.bf16.msra.mxu0 %v1888_v21  ;;  %v1664_v24 = vrot.slane %v2488_v3, 4 }
 0x118   :  { %1897 = vmatpush1.bf16.msra.mxu1 %v1896_v45  ;;  %v1641_v53 = vadd.f32 %v1640_v17, %v1632_v50  ;;  %v1653_v55 = vadd.f32 %v1652_v11, %v1634_v51 }
 0x11a   :  { %1858 = vmatmul.mubr.msk.f32.vlgmr.msra.gmra.mrb[24].mxu0 %vm948_vm1, %v2422_v52  ;;  %v1642_v58 = vrot.slane %v1641_v53, 2 }
 0x11b   :  { %1862 = vmatmul.mubr.msk.f32.vlgmr.msra.gmra.mrb[24].mxu1 %vm948_vm1, %v2422_v52  ;;  %1209 = vmatprep.mubr.f32.mxu0 %v2104_v6  ;;  %v2485_v52 = vshrl.u32 %v1701_v61, 7 }
 0x11c   :  { %1298 = vmatprep.mubr.f32.mxu1 %v2104_v6  ;;  %v1643_v16 = vadd.f32 %v1642_v58, %v1641_v53 }
 0x11d   :  { %v1703_v2 = vsub.s32 0, %v2485_v52 }
 0x11e   :  { %1859 = vmatmul.mubr.msk.f32.gmra.mrb[26].mxu0 %vm948_vm1, %v569_v59  ;;  %v1644_v11 = vrot.slane %v1643_v16, 1 }
 0x11f   :  { %1863 = vmatmul.mubr.msk.f32.gmra.mrb[26].mxu1 %vm948_vm1, %v569_v59  ;;  %1215 = vmatprep.mubr.f32.mxu0 %v2104_v6  ;;  %v2496_v59 = vunpack.c.l.s4 %v2106_v42 }
 0x120   :  { %1304 = vmatprep.mubr.f32.mxu1 %v2104_v6 }
 0x122   :  { %1860 = vmatmul.mubr.msk.f32.gmra.mrb[28].mxu0 %vm948_vm1, %v570_v18 }
 0x123   :  { %1864 = vmatmul.mubr.msk.f32.gmra.mrb[28].mxu1 %vm948_vm1, %v570_v18  ;;  %1221 = vmatprep.mubr.f32.mxu0 %v2104_v6  ;;  %v1654_v18 = vrot.slane %v1653_v55, 2 }
 0x124   :  { %1310 = vmatprep.mubr.f32.mxu1 %v2104_v6  ;;  %v1633_v6 = vmul.f32 %v1630_v47, %v2164_v1  ;;  %v1659_v1 = vadd.f32 %v1658_v33, %v1635_v49  ;;  %v2513_v47 = vrot.slane %v1699_v8, %v1703_v2 }
 0x125   :  { %v1655_v21 = vadd.f32 %v1654_v18, %v1653_v55 }
 0x126   :  { %1861 = vmatmul.mubr.msk.f32.gmra.mrb[30].mxu0 %vm948_vm1, %v571_v38  ;;  %v1646_v5 = vrot.slane %v1633_v6, 4  ;;  %v1660_v22 = vrot.slane %v1659_v1, 2 }
 0x127   :  { %1865 = vmatmul.mubr.msk.f32.gmra.mrb[30].mxu1 %vm948_vm1, %v571_v38 }
 0x128   :  { %v1647_v54 = vadd.f32 %v1646_v5, %v1633_v6  ;;  %v1661_v45 = vadd.f32 %v1660_v22, %v1659_v1 }
 0x12a   :  { %v1648_v0 = vrot.slane %v1647_v54, 2 }
 0x12c   :  { %v1649_v36 = vadd.f32 %v1648_v0, %v1647_v54  ;;  %v1656_v54 = vrot.slane %v1655_v21, 1  ;;  %v2520_v0 = vadd.f32 %v1644_v11, %v1643_v16 }
 0x1db   :  { %v1027_v4 = vpop.f32.mrb[16].mxu0 }
 0x1dc   :  { %v1337_v60 = vadd.f32 %v2467_v28, %v1027_v4  ;;  %v1116_v62 = vpop.f32.mrb[16].mxu1  ;;  %v1029_v63 = vpop.f32.mrb[17].mxu0  ;;  %v1650_v4 = vrot.slane %v1649_v36, 1 }
 0x1dd   :  { %v1339_v12 = vadd.f32 %v2467_v28, %v1116_v62  ;;  %v1338_v14 = vadd.f32 %v2467_v28, %v1029_v63  ;;  %v1118_v15 = vpop.f32.mrb[17].mxu1  ;;  %v1662_v63 = vrot.slane %v1661_v45, 1 }
 0x1de   :  { %v1369_v19 = vmul.f32 0.5, %v1337_v60  ;;  %v1340_v20 = vadd.f32 %v2467_v28, %v1118_v15 }
 0x1df   :  { %v1371_v27 = vmul.f32 0.5, %v1339_v12  ;;  %v1370_v30 = vmul.f32 0.5, %v1338_v14  ;;  %v1033_v10 = vpop.f32.mrb[18].mxu0 }
 0x1e0   :  { %2000 = vtanh.f32 %v1369_v19  ;;  %v1372_v31 = vmul.f32 0.5, %v1340_v20  ;;  %v1345_v32 = vadd.f32 %v2475_v46, %v1033_v10  ;;  %v1122_v34 = vpop.f32.mrb[18].mxu1  ;;  %v1035_v35 = vpop.f32.mrb[19].mxu0  ;;  %v2524_v20 = vadd.f32 %v1656_v54, %v1655_v21 }
 0x1e1   :  { %2002 = vtanh.f32 %v1371_v27  ;;  %v1347_v37 = vadd.f32 %v2475_v46, %v1122_v34  ;;  %v1346_v38 = vadd.f32 %v2475_v46, %v1035_v35  ;;  %v1124_v39 = vpop.f32.mrb[19].mxu1  ;;  %v2527_v34 = vadd.f32 %v1650_v4, %v1649_v36 }
 0x1e2   :  { %2004 = vtanh.f32 %v1370_v30  ;;  %v1377_v25 = vmul.f32 0.5, %v1345_v32  ;;  %v1348_v40 = vadd.f32 %v2475_v46, %v1124_v39  ;;  %v2529_v39 = vadd.f32 %v1662_v63, %v1661_v45 }
 0x1e3   :  { %2006 = vtanh.f32 %v1372_v31  ;;  %v1379_v43 = vmul.f32 0.5, %v1347_v37  ;;  %v1378_v23 = vmul.f32 0.5, %v1346_v38  ;;  %v1039_v26 = vpop.f32.mrb[20].mxu0 }
 0x1e4   :  { %2008 = vtanh.f32 %v1377_v25  ;;  %v1380_v50 = vmul.f32 0.5, %v1348_v40  ;;  %v1353_v6 = vadd.f32 %v2469_v29, %v1039_v26  ;;  %v1128_v51 = vpop.f32.mrb[20].mxu1  ;;  %v1041_v49 = vpop.f32.mrb[21].mxu0 }
 0x1e5   :  { %2010 = vtanh.f32 %v1379_v43  ;;  %v1355_v61 = vadd.f32 %v2469_v29, %v1128_v51  ;;  %v1354_v17 = vadd.f32 %v2469_v29, %v1041_v49  ;;  %v1130_v5 = vpop.f32.mrb[21].mxu1 }
 0x1e6   :  { %2012 = vtanh.f32 %v1378_v23  ;;  %v1385_v33 = vmul.f32 0.5, %v1353_v6  ;;  %v1356_v53 = vadd.f32 %v2469_v29, %v1130_v5 }
 0x1e7   :  { %2014 = vtanh.f32 %v1380_v50  ;;  %v1387_v55 = vmul.f32 0.5, %v1355_v61  ;;  %v1386_v1 = vmul.f32 0.5, %v1354_v17  ;;  %v1045_v2 = vpop.f32.mrb[22].mxu0 }
 0x1e8   :  { %2016 = vtanh.f32 %v1385_v33  ;;  %v1388_v58 = vmul.f32 0.5, %v1356_v53  ;;  %v1361_v42 = vadd.f32 %v2477_v48, %v1045_v2  ;;  %v1134_v60 = vpop.f32.mrb[22].mxu1  ;;  %v1047_v62 = vpop.f32.mrb[23].mxu0 }
 0x1e9   :  { %2018 = vtanh.f32 %v1387_v55  ;;  %v1363_v12 = vadd.f32 %v2477_v48, %v1134_v60  ;;  %v1362_v14 = vadd.f32 %v2477_v48, %v1047_v62  ;;  %v1136_v15 = vpop.f32.mrb[23].mxu1 }
 0x1ea   :  { %v2001_v18 = vpop.eup %2000  ;;  %2020 = vtanh.f32 %v1386_v1  ;;  %v1393_v19 = vmul.f32 0.5, %v1361_v42  ;;  %v1364_v22 = vadd.f32 %v2477_v48, %v1136_v15 }
 0x1eb   :  { %v2003_v27 = vpop.eup %2002  ;;  %v1433_v30 = vmul.f32 0.5, %v2001_v18  ;;  %2022 = vtanh.f32 %v1388_v58  ;;  %v1395_v10 = vmul.f32 0.5, %v1363_v12  ;;  %v1394_v31 = vmul.f32 0.5, %v1362_v14 }
 0x1ec   :  { %v2005_v32 = vpop.eup %2004  ;;  %v1435_v16 = vmul.f32 0.5, %v2003_v27  ;;  %2024 = vtanh.f32 %v1393_v19  ;;  %v1396_v35 = vmul.f32 0.5, %v1364_v22 }
 0x1ed   :  { %v2007_v8 = vpop.eup %2006  ;;  %v1465_v37 = vadd.f32 0.5, %v1433_v30  ;;  %v1434_v38 = vmul.f32 0.5, %v2005_v32  ;;  %2026 = vtanh.f32 %v1395_v10  ;;  %v1205_v21 = vpop.f32.mrb[24].mxu0 }
 0x1ee   :  { %v2009_v25 = vpop.eup %2008  ;;  %v1467_v40 = vadd.f32 0.5, %v1435_v16  ;;  %v1436_v43 = vmul.f32 0.5, %v2007_v8  ;;  %2028 = vtanh.f32 %v1394_v31  ;;  %v1341_v23 = vadd.f32 %v2467_v28, %v1205_v21  ;;  %v1294_v26 = vpop.f32.mrb[24].mxu1 }
 0x1ef   :  { %v1207_v50 = vpop.f32.mrb[25].mxu0  ;;  %v2011_v6 = vpop.eup %2010  ;;  %v1523_v36 = vmul.f32 %v2471_v41, %v1465_v37  ;;  %v1466_v51 = vadd.f32 0.5, %v1434_v38  ;;  %v1441_v49 = vmul.f32 0.5, %v2009_v25  ;;  %2030 = vtanh.f32 %v1396_v35 }
 0x1f0   :  { %v2533_v61 = vpop.f32.mrb[25].mxu1  ;;  %v2013_v17 = vpop.eup %2012  ;;  %v1525_v45 = vmul.f32 %v2471_v41, %v1467_v40  ;;  %v1468_v5 = vadd.f32 0.5, %v1436_v43  ;;  %v1443_v11 = vmul.f32 0.5, %v2011_v6  ;;  %v1373_v33 = vmul.f32 0.5, %v1341_v23 }
 0x1f1   :  { %v2015_v53 = vpop.eup %2014  ;;  %v1524_v54 = vmul.f32 %v2471_v41, %v1466_v51  ;;  %v1473_v55 = vadd.f32 0.5, %v1441_v49  ;;  %v1442_v1 = vmul.f32 0.5, %v2013_v17  ;;  %v1343_v2 = vadd.f32 %v2467_v28, %v1294_v26  ;;  %v2538_v4 = vpop.f32.mrb[26].mxu0 }
 0x1f2   :  { %v2017_v58 = vpop.eup %2016  ;;  %v1526_v42 = vmul.f32 %v2471_v41, %v1468_v5  ;;  %v1475_v60 = vadd.f32 0.5, %v1443_v11  ;;  %v1444_v62 = vmul.f32 0.5, %v2015_v53  ;;  %2032 = vtanh.f32 %v1373_v33  ;;  %v2541_v63 = vpop.f32.mrb[26].mxu1 }
 0x1f3   :  { %v2543_v12 = vpop.f32.mrb[27].mxu0  ;;  %v2019_v14 = vpop.eup %2018  ;;  %v1531_v15 = vmul.f32 %v2483_v13, %v1473_v55  ;;  %v1474_v18 = vadd.f32 0.5, %v1442_v1  ;;  %v1449_v19 = vmul.f32 0.5, %v2017_v58  ;;  %v1375_v22 = vmul.f32 0.5, %v1343_v2 }
 0x1f4   :  { %v2546_v27 = vpop.f32.mrb[27].mxu1  ;;  %v2021_v30 = vpop.eup %2020  ;;  %v1533_v10 = vmul.f32 %v2483_v13, %v1475_v60  ;;  %v1476_v31 = vadd.f32 0.5, %v1444_v62  ;;  %v1451_v32 = vmul.f32 0.5, %v2019_v14  ;;  %v1342_v16 = vadd.f32 %v2467_v28, %v1207_v50 }
 0x1f5   :  { %v2023_v35 = vpop.eup %2022  ;;  %v1555_v8 = vadd.f32 %v1531_v15, %v1523_v36  ;;  %v1532_v37 = vmul.f32 %v2483_v13, %v1474_v18  ;;  %v1481_v38 = vadd.f32 0.5, %v1449_v19  ;;  %v1450_v21 = vmul.f32 0.5, %v2021_v30  ;;  %v2551_v25 = vpop.f32.mrb[28].mxu0 }
 0x1f6   :  { %v2025_v40 = vpop.eup %2024  ;;  %v1573_v43 = vadd.f32 %v1533_v10, %v1525_v45  ;;  %v1534_v23 = vmul.f32 %v2483_v13, %v1476_v31  ;;  %v1483_v26 = vadd.f32 0.5, %v1451_v32  ;;  %v1452_v6 = vmul.f32 0.5, %v2023_v35  ;;  %v2554_v51 = vpop.f32.mrb[28].mxu1 }
 0x1f7   :  { %v2556_v49 = vpop.f32.mrb[29].mxu0  ;;  %v2027_v17 = vpop.eup %2026  ;;  %v1564_v50 = vadd.f32 %v1532_v37, %v1524_v54  ;;  %v1539_v36 = vmul.f32 %v2473_v44, %v1481_v38  ;;  %v1482_v5 = vadd.f32 0.5, %v1450_v21  ;;  %v1457_v11 = vmul.f32 0.5, %v2025_v40 }
 0x1f8   :  { %v2559_v33 = vpop.f32.mrb[29].mxu1  ;;  %v2029_v53 = vpop.eup %2028  ;;  %v1582_v55 = vadd.f32 %v1534_v23, %v1526_v42  ;;  %v1541_v45 = vmul.f32 %v2473_v44, %v1483_v26  ;;  %v1484_v1 = vadd.f32 0.5, %v1452_v6  ;;  %v1459_v2 = vmul.f32 0.5, %v2027_v17 }
 0x1f9   :  { %v2031_v58 = vpop.eup %2030  ;;  %v1556_v60 = vadd.f32 %v1555_v8, %v1539_v36  ;;  %v1540_v62 = vmul.f32 %v2473_v44, %v1482_v5  ;;  %v1489_v14 = vadd.f32 0.5, %v1457_v11  ;;  %v1458_v15 = vmul.f32 0.5, %v2029_v53  ;;  %v2563_v18 = vpop.f32.mrb[30].mxu0 }
 0x1fa   :  { %v1574_v54 = vadd.f32 %v1573_v43, %v1541_v45  ;;  %v1542_v19 = vmul.f32 %v2473_v44, %v1484_v1  ;;  %v1491_v30 = vadd.f32 0.5, %v1459_v2  ;;  %v1460_v10 = vmul.f32 0.5, %v2031_v58  ;;  %v2566_v31 = vpop.f32.mrb[30].mxu1  ;;  %v2568_v42 = vpop.f32.mrb[31].mxu0 }
 0x1fb   :  { %v1565_v32 = vadd.f32 %v1564_v50, %v1540_v62  ;;  %v1547_v35 = vmul.f32 %v2490_v56, %v1489_v14  ;;  %v1490_v37 = vadd.f32 0.5, %v1458_v15  ;;  %2034 = vtanh.f32 %v1375_v22  ;;  %v2571_v8 = vpop.f32.mrb[31].mxu1 }
 0x1fc   :  { %v2033_v38 = vpop.eup %2032  ;;  %v1583_v21 = vadd.f32 %v1582_v55, %v1542_v19  ;;  %v1549_v40 = vmul.f32 %v2490_v56, %v1491_v30  ;;  %v1492_v43 = vadd.f32 0.5, %v1460_v10  ;;  %v1374_v23 = vmul.f32 0.5, %v1342_v16 }
 0x1fd   :  { %v1557_v26 = vadd.f32 %v1556_v60, %v1547_v35  ;;  %v1548_v6 = vmul.f32 %v2490_v56, %v1490_v37  ;;  %v1437_v17 = vmul.f32 0.5, %v2033_v38  ;;  %v1344_v36 = vadd.f32 %v2467_v28, %v2533_v61 }
 0x1fe   :  { %v1575_v50 = vadd.f32 %v1574_v54, %v1549_v40  ;;  %v1550_v5 = vmul.f32 %v2490_v56, %v1492_v43  ;;  %2036 = vtanh.f32 %v1374_v23  ;;  %v1349_v22 = vadd.f32 %v2475_v46, %v2538_v4 }
 0x1ff   :  { %v1558_v11 = vrot.slane %v1557_v26, 4  ;;  %v1566_v53 = vadd.f32 %v1565_v32, %v1548_v6  ;;  %v1469_v55 = vadd.f32 0.5, %v1437_v17  ;;  %v1376_v45 = vmul.f32 0.5, %v1344_v36 }
 0x200   :  { %v1576_v1 = vrot.slane %v1575_v50, 4  ;;  %v1584_v16 = vadd.f32 %v1583_v21, %v1550_v5  ;;  %v1381_v2 = vmul.f32 0.5, %v1349_v22  ;;  %v1351_v58 = vadd.f32 %v2475_v46, %v2541_v63 }
 0x201   :  { %v1559_v60 = vadd.f32 %v1558_v11, %v1557_v26  ;;  %v1567_v62 = vrot.slane %v1566_v53, 4  ;;  %v2583_v28 = vmul.f32 %v2471_v41, %v1469_v55  ;;  %2038 = vtanh.f32 %v1376_v45 }
 0x202   :  { %v1577_v61 = vadd.f32 %v1576_v1, %v1575_v50  ;;  %v1585_v14 = vrot.slane %v1584_v16, 4  ;;  %2040 = vtanh.f32 %v1381_v2  ;;  %v1383_v4 = vmul.f32 0.5, %v1351_v58 }
 0x203   :  { %v1560_v15 = vrot.slane %v1559_v60, 2  ;;  %v1568_v54 = vadd.f32 %v1567_v62, %v1566_v53  ;;  %v1350_v19 = vadd.f32 %v2475_v46, %v2543_v12  ;;  %v1352_v30 = vadd.f32 %v2475_v46, %v2546_v27 }
 0x204   :  { %v1578_v10 = vrot.slane %v1577_v61, 2  ;;  %v1586_v63 = vadd.f32 %v1585_v14, %v1584_v16  ;;  %2042 = vtanh.f32 %v1383_v4  ;;  %v1357_v32 = vadd.f32 %v2469_v29, %v2551_v25 }
 0x205   :  { %v2035_v35 = vpop.eup %2034  ;;  %v1561_v37 = vadd.f32 %v1560_v15, %v1559_v60  ;;  %v1569_v38 = vrot.slane %v1568_v54, 2  ;;  %v1382_v21 = vmul.f32 0.5, %v1350_v19  ;;  %v1384_v40 = vmul.f32 0.5, %v1352_v30 }
 0x206   :  { %v1579_v43 = vadd.f32 %v1578_v10, %v1577_v61  ;;  %v1587_v23 = vrot.slane %v1586_v63, 2  ;;  %v1439_v26 = vmul.f32 0.5, %v2035_v35  ;;  %v1389_v6 = vmul.f32 0.5, %v1357_v32 }
 0x207   :  { %v1562_v17 = vrot.slane %v1561_v37, 1  ;;  %v1570_v12 = vadd.f32 %v1569_v38, %v1568_v54  ;;  %2044 = vtanh.f32 %v1382_v21  ;;  %v1359_v46 = vadd.f32 %v2469_v29, %v2554_v51 }
 0x208   :  { %v2037_v27 = vpop.eup %2036  ;;  %v1580_v36 = vrot.slane %v1579_v43, 1  ;;  %v1588_v50 = vadd.f32 %v1587_v23, %v1586_v63  ;;  %v1471_v5 = vadd.f32 0.5, %v1439_v26  ;;  %2046 = vtanh.f32 %v1384_v40 }
 0x209   :  { %v1563_v25 = vadd.f32 %v1562_v17, %v1561_v37  ;;  %v1571_v22 = vrot.slane %v1570_v12, 1  ;;  %v1438_v11 = vmul.f32 0.5, %v2037_v27  ;;  %2048 = vtanh.f32 %v1389_v6 }
 0x20a   :  { %v1581_v53 = vadd.f32 %v1580_v36, %v1579_v43  ;;  %v1589_v55 = vrot.slane %v1588_v50, 1  ;;  %v1529_v45 = vmul.f32 %v2471_v41, %v1471_v5  ;;  %v1391_v1 = vmul.f32 0.5, %v1359_v46 }
 0x20b   :  { %v2039_v16 = vpop.eup %2038  ;;  %v1688_v2 = vadd.f32 %v2520_v0, %v1563_v25  ;;  %v1572_v58 = vadd.f32 %v1571_v22, %v1570_v12  ;;  %v1470_v60 = vadd.f32 0.5, %v1438_v11  ;;  %v1358_v51 = vadd.f32 %v2469_v29, %v2556_v49 }
 0x20c   :  { %v2041_v62 = vpop.eup %2040  ;;  %v1690_v61 = vadd.f32 %v2524_v20, %v1581_v53  ;;  %v1590_v14 = vadd.f32 %v1589_v55, %v1588_v50  ;;  %v1440_v4 = vmul.f32 0.5, %v2039_v16  ;;  %2050 = vtanh.f32 %v1391_v1 }
 0x20d   :  { %v1689_v15 = vadd.f32 %v2527_v34, %v1572_v58  ;;  %v1528_v54 = vmul.f32 %v2471_v41, %v1470_v60  ;;  %v1445_v19 = vmul.f32 0.5, %v2041_v62  ;;  %v1390_v30 = vmul.f32 0.5, %v1358_v51 }
 0x20e   :  { %v2043_v10 = vpop.eup %2042  ;;  %v1691_v0 = vadd.f32 %v2529_v39, %v1590_v14  ;;  %v1472_v63 = vadd.f32 0.5, %v1440_v4  ;;  %v1360_v32 = vadd.f32 %v2469_v29, %v2559_v33  ;;  %v1365_v49 = vadd.f32 %v2477_v48, %v2563_v18 }
 0x20f   :  { %v1477_v20 = vadd.f32 0.5, %v1445_v19  ;;  %v1447_v35 = vmul.f32 0.5, %v2043_v10  ;;  %2052 = vtanh.f32 %v1390_v30  ;;  %v1367_v34 = vadd.f32 %v2477_v48, %v2566_v31 }
 0x210   :  { %v1530_v37 = vmul.f32 %v2471_v41, %v1472_v63  ;;  %v1392_v38 = vmul.f32 0.5, %v1360_v32  ;;  %v1397_v21 = vmul.f32 0.5, %v1365_v49  ;;  %v1366_v39 = vadd.f32 %v2477_v48, %v2568_v42 }
 0x211   :  { %v2045_v40 = vpop.eup %2044  ;;  %v1535_v43 = vmul.f32 %v2483_v13, %v1477_v20  ;;  %v1479_v29 = vadd.f32 0.5, %v1447_v35  ;;  %v1399_v33 = vmul.f32 0.5, %v1367_v34  ;;  %v1368_v18 = vadd.f32 %v2477_v48, %v2571_v8 }
 0x212   :  { %v2047_v23 = vpop.eup %2046  ;;  %v1446_v26 = vmul.f32 0.5, %v2045_v40  ;;  %2054 = vtanh.f32 %v1392_v38  ;;  %v1398_v6 = vmul.f32 0.5, %v1366_v39  ;;  %v1705_v31 = vadd.f32 %v2513_v47, %v1688_v2 }
 0x213   :  { %v2049_v41 = vpop.eup %2048  ;;  %v1591_v17 = vadd.f32 %v1535_v43, %v2583_v28  ;;  %v1537_v12 = vmul.f32 %v2483_v13, %v1479_v29  ;;  %v1448_v42 = vmul.f32 0.5, %v2047_v23  ;;  %2056 = vtanh.f32 %v1397_v21 }
 0x214   :  { %v1478_v46 = vadd.f32 0.5, %v1446_v26  ;;  %v1453_v27 = vmul.f32 0.5, %v2049_v41  ;;  %2058 = vtanh.f32 %v1399_v33  ;;  %v1400_v36 = vmul.f32 0.5, %v1368_v18 }
 0x215   :  { %v1609_v50 = vadd.f32 %v1537_v12, %v1529_v45  ;;  %v1480_v5 = vadd.f32 0.5, %v1448_v42  ;;  %2060 = vtanh.f32 %v1398_v6  ;;  %v1706_v48 = vadd.f32 %v2513_v47, %v1689_v15 }
 0x216   :  { %v2051_v8 = vpop.eup %2050  ;;  %v1536_v25 = vmul.f32 %v2483_v13, %v1478_v46  ;;  %v1485_v22 = vadd.f32 0.5, %v1453_v27  ;;  %2062 = vtanh.f32 %v1400_v36  ;;  %v1707_v28 = vadd.f32 %v2513_v47, %v1690_v61 }
 0x217   :  { %v1538_v11 = vmul.f32 %v2483_v13, %v1480_v5  ;;  %v1455_v53 = vmul.f32 0.5, %v2051_v8  ;;  %v1708_v55 = vadd.f32 %v2513_v47, %v1691_v0  ;;  %v1713_v1 = vmul.f32 0.5, %v1705_v31 }
 0x218   :  { %v1600_v16 = vadd.f32 %v1536_v25, %v1528_v54  ;;  %v1543_v45 = vmul.f32 %v2473_v44, %v1485_v22  ;;  %v1714_v2 = vmul.f32 0.5, %v1706_v48  ;;  %v1715_v58 = vmul.f32 0.5, %v1707_v28 }
 0x219   :  { %v2053_v60 = vpop.eup %2052  ;;  %v1618_v51 = vadd.f32 %v1538_v11, %v1530_v37  ;;  %v1487_v62 = vadd.f32 0.5, %v1455_v53  ;;  %v1716_v14 = vmul.f32 0.5, %v1708_v55  ;;  %2064 = vtanh.f32 %v1713_v1 }
 0x21a   :  { %v1670_v4 = vrot.slane %v2494_v57, 4  ;;  %v1592_v15 = vadd.f32 %v1591_v17, %v1543_v45  ;;  %v1454_v61 = vmul.f32 0.5, %v2053_v60  ;;  %2066 = vtanh.f32 %v1714_v2 }
 0x21b   :  { %v1676_v13 = vrot.slane %v2500_v9, 4  ;;  %v1545_v19 = vmul.f32 %v2473_v44, %v1487_v62  ;;  %2068 = vtanh.f32 %v1715_v58  ;;  %v1682_v30 = vrot.slane %v2505_v7, 4 }
 0x21c   :  { %v2055_v54 = vpop.eup %2054  ;;  %v1486_v10 = vadd.f32 0.5, %v1454_v61  ;;  %2070 = vtanh.f32 %v1716_v14  ;;  %v1665_v63 = vadd.f32 %v1664_v24, %v2488_v3  ;;  %v1671_v35 = vadd.f32 %v1670_v4, %v2494_v57 }
 0x21d   :  { %v2057_v0 = vpop.eup %2056  ;;  %v1610_v32 = vadd.f32 %v1609_v50, %v1545_v19  ;;  %v1456_v49 = vmul.f32 0.5, %v2055_v54  ;;  %v1759_v34 = vunpack.c.0.s8 %v2496_v59  ;;  %v1677_v39 = vadd.f32 %v1676_v13, %v2500_v9 }
 0x21e   :  { %v2059_v20 = vpop.eup %2058  ;;  %v1544_v37 = vmul.f32 %v2473_v44, %v1486_v10  ;;  %v1461_v38 = vmul.f32 0.5, %v2057_v0  ;;  %v1683_v33 = vadd.f32 %v1682_v30, %v2505_v7  ;;  %v1666_v23 = vrot.slane %v1665_v63, 2 }
 0x21f   :  { %v2061_v21 = vpop.eup %2060  ;;  %v1488_v40 = vadd.f32 0.5, %v1456_v49  ;;  %v1463_v43 = vmul.f32 0.5, %v2059_v20  ;;  %v1672_v59 = vrot.slane %v1671_v35, 2  ;;  %v2636_v31 = vsub.s32 %v1759_v34, %v2485_v52 }
 0x220   :  { %v2063_v29 = vpop.eup %2062  ;;  %v1601_v18 = vadd.f32 %v1600_v16, %v1544_v37  ;;  %v1493_v3 = vadd.f32 0.5, %v1461_v38  ;;  %v1462_v24 = vmul.f32 0.5, %v2061_v21  ;;  %v1678_v12 = vrot.slane %v1677_v39, 2 }
 0x221   :  { %v1546_v26 = vmul.f32 %v2473_v44, %v1488_v40  ;;  %v1495_v57 = vadd.f32 0.5, %v1463_v43  ;;  %v1464_v6 = vmul.f32 0.5, %v2063_v29  ;;  %v1684_v36 = vrot.slane %v1683_v33, 2 }
 0x222   :  { %v1551_v41 = vmul.f32 %v2490_v56, %v1493_v3  ;;  %v1494_v9 = vadd.f32 0.5, %v1462_v24  ;;  %v1667_v8 = vadd.f32 %v1666_v23, %v1665_v63  ;;  %v1679_v60 = vadd.f32 %v1678_v12, %v1677_v39 }
 0x223   :  { %v2065_v17 = vpop.eup %2064  ;;  %v1619_v42 = vadd.f32 %v1618_v51, %v1546_v26  ;;  %v1553_v7 = vmul.f32 %v2490_v56, %v1495_v57  ;;  %v1496_v46 = vadd.f32 0.5, %v1464_v6  ;;  %v1673_v19 = vadd.f32 %v1672_v59, %v1671_v35 }
 0x224   :  { %v2067_v27 = vpop.eup %2066  ;;  %v1593_v50 = vadd.f32 %v1592_v15, %v1551_v41  ;;  %v1552_v44 = vmul.f32 %v2490_v56, %v1494_v9  ;;  %v1729_v5 = vmul.f32 0.5, %v2065_v17  ;;  %v1668_v20 = vrot.slane %v1667_v8, 1 }
 0x225   :  { %v2069_v48 = vpop.eup %2068  ;;  %v1611_v25 = vadd.f32 %v1610_v32, %v1553_v7  ;;  %v1554_v52 = vmul.f32 %v2490_v56, %v1496_v46  ;;  %v1730_v22 = vmul.f32 0.5, %v2067_v27  ;;  %v1685_v56 = vadd.f32 %v1684_v36, %v1683_v33 }
 0x226   :  { %v2071_v28 = vpop.eup %2070  ;;  %v1594_v11 = vrot.slane %v1593_v50, 4  ;;  %v1602_v53 = vadd.f32 %v1601_v18, %v1552_v44  ;;  %v1731_v55 = vmul.f32 0.5, %v2069_v48  ;;  %v1737_v1 = vadd.f32 0.5, %v1729_v5 }
 0x227   :  { %v1612_v16 = vrot.slane %v1611_v25, 4  ;;  %v1620_v45 = vadd.f32 %v1619_v42, %v1554_v52  ;;  %v1732_v2 = vmul.f32 0.5, %v2071_v28  ;;  %v1738_v58 = vadd.f32 0.5, %v1730_v22 }
 0x228   :  { %v1595_v51 = vadd.f32 %v1594_v11, %v1593_v50  ;;  %v1603_v62 = vrot.slane %v1602_v53, 4  ;;  %v1739_v14 = vadd.f32 0.5, %v1731_v55  ;;  %v1680_v38 = vrot.slane %v1679_v60, 1 }
 0x229   :  { %v1613_v4 = vadd.f32 %v1612_v16, %v1611_v25  ;;  %v1621_v15 = vrot.slane %v1620_v45, 4  ;;  %v1740_v61 = vadd.f32 0.5, %v1732_v2  ;;  %v1753_v13 = vcombine.low %v1737_v1, %v1738_v58 }
 0x22a   :  { %v1596_v54 = vrot.slane %v1595_v51, 2  ;;  %v1604_v30 = vadd.f32 %v1603_v62, %v1602_v53  ;;  %v1674_v29 = vrot.slane %v1673_v19, 1  ;;  %v1686_v18 = vrot.slane %v1685_v56, 1 }
 0x22b   :  { %v1614_v10 = vrot.slane %v1613_v4, 2  ;;  %v1622_v0 = vadd.f32 %v1621_v15, %v1620_v45  ;;  %v1754_v63 = vcombine.low %v1739_v14, %v1740_v61  ;;  %v1763_v32 = vrot.slane %v1753_v13, %v2636_v31 }
 0x22c   :  { %v1597_v49 = vadd.f32 %v1596_v54, %v1595_v51  ;;  %v1605_v34 = vrot.slane %v1604_v30, 2  ;;  %v1669_v23 = vadd.f32 %v1668_v20, %v1667_v8  ;;  %v1681_v6 = vadd.f32 %v1680_v38, %v1679_v60 }
 0x22d   :  { %v1615_v37 = vadd.f32 %v1614_v10, %v1613_v4  ;;  %v1623_v21 = vrot.slane %v1622_v0, 2  ;;  %v1770_v39 = vrot.slane %v1754_v63, %v2636_v31  ;;  %v1675_v17 = vadd.f32 %v1674_v29, %v1673_v19 }
 0x22e   :  { %v1598_v40 = vrot.slane %v1597_v49, 1  ;;  %v1606_v43 = vadd.f32 %v1605_v34, %v1604_v30  ;;  %v1687_v7 = vadd.f32 %v1686_v18, %v1685_v56 }
 0x22f   :  { %v1616_v35 = vrot.slane %v1615_v37, 1  ;;  %v1624_v33 = vadd.f32 %v1623_v21, %v1622_v0  ;;  %v1785_v3 = vcombine.low %v1763_v32, %v1770_v39 }
 0x230   :  { %v1599_v24 = vadd.f32 %v1598_v40, %v1597_v49  ;;  %v1607_v26 = vrot.slane %v1606_v43, 1 }
 0x231   :  { %v1617_v57 = vadd.f32 %v1616_v35, %v1615_v37  ;;  %v1625_v59 = vrot.slane %v1624_v33, 1  ;;  %v1793_v61 = vrot.slane %v1785_v3, %v2636_v31 }
 0x232   :  { %v1692_v41 = vadd.f32 %v1669_v23, %v1599_v24  ;;  %v1608_v9 = vadd.f32 %v1607_v26, %v1606_v43 }
 0x233   :  { %v1694_v12 = vadd.f32 %v1681_v6, %v1617_v57  ;;  %v1626_v42 = vadd.f32 %v1625_v59, %v1624_v33 }
 0x234   :  { %v1693_v46 = vadd.f32 %v1675_v17, %v1608_v9  ;;  %v1709_v27 = vadd.f32 %v2513_v47, %v1692_v41 }
 0x235   :  { %v1695_v36 = vadd.f32 %v1687_v7, %v1626_v42  ;;  %v1711_v50 = vadd.f32 %v2513_v47, %v1694_v12 }
 0x236   :  { %v1710_v44 = vadd.f32 %v2513_v47, %v1693_v46  ;;  %v1717_v5 = vmul.f32 0.5, %v1709_v27 }
 0x237   :  { %v1712_v48 = vadd.f32 %v2513_v47, %v1695_v36  ;;  %v1719_v8 = vmul.f32 0.5, %v1711_v50 }
 0x238   :  { %v1718_v25 = vmul.f32 0.5, %v1710_v44  ;;  %2072 = vtanh.f32 %v1717_v5 }
 0x239   :  { %v1720_v52 = vmul.f32 0.5, %v1712_v48  ;;  %2074 = vtanh.f32 %v1719_v8 }
 0x23a   :  { %2076 = vtanh.f32 %v1718_v25 }
 0x23b   :  { %2078 = vtanh.f32 %v1720_v52 }
 0x242   :  { %v2073_v22 = vpop.eup %2072 }
 0x243   :  { %v2075_v28 = vpop.eup %2074  ;;  %v1733_v11 = vmul.f32 0.5, %v2073_v22 }
 0x244   :  { %v2077_v53 = vpop.eup %2076  ;;  %v1735_v55 = vmul.f32 0.5, %v2075_v28 }
 0x245   :  { %v2079_v1 = vpop.eup %2078  ;;  %v1734_v16 = vmul.f32 0.5, %v2077_v53  ;;  %v1741_v45 = vadd.f32 0.5, %v1733_v11 }
 0x246   :  { %v1736_v2 = vmul.f32 0.5, %v2079_v1  ;;  %v1743_v58 = vadd.f32 0.5, %v1735_v55 }
 0x247   :  { %v1742_v60 = vadd.f32 0.5, %v1734_v16 }
 0x248   :  { %v1744_v51 = vadd.f32 0.5, %v1736_v2 }
 0x249   :  { %v1755_v47 = vcombine.low %v1741_v45, %v1742_v60 }
 0x24a   :  { %v1756_v62 = vcombine.low %v1743_v58, %v1744_v51 }
 0x24b   :  { %v1777_v14 = vrot.slane %v1755_v47, %v2636_v31 }
 0x24c   :  { %v1784_v4 = vrot.slane %v1756_v62, %v2636_v31 }
 0x24e   :  { %v1786_v15 = vcombine.low %v1777_v14, %v1784_v4 }
 0x250   :  { %v1800_v13 = vrot.slane %v1786_v15, %v2636_v31 }
 0x252   :  { %v1801_v19 = vcombine.low %v1793_v61, %v1800_v13 }
 0x254   :  { %1803 = vst [vmem:[#allocation3] sm:$0xff] %v1801_v19 }
 0x255   :  { %2091 = shalt.err (!%p2088_p4)
}
 0x256   :  { %s2092_s26 = scalar_lea.hbm %s2673_s9, 128 }
 0x257   :  { %p2093_p5 = scmp.ne.s32.totalorder %s2673_s9, %s2092_s26  ;;  %p2096_p6 = scmp.lt.u32.totalorder %s2092_s26, %s2673_s9 }
 0x259   :  { %p2098_p7 = pnand %p2096_p6, %p2093_p5 }
 0x25b   :  { %2101 = shalt.err (!%p2098_p7)
}
 0x25c   :  { %1813 = dma.vmem_to_hbm [thread:$0]  %s1811_s22, 128, %s2673_s9, [#allocation4]  }
 0x25d   :  { %2102 = dma.done.wait [#allocation4], 128  }
 0x25e   :  { %2103 = vsyncadd [#allocation4], 4294967168 }
 0x25f   :  { %1817 = vsyncpa [#allocation4], 1 }

</bundles_post_ra>
